<compile_context>
chip_gen: v7x
topology: tpu7x:2x2x1
jax: 0.10.0
libtpu: 0.0.40
codegen_flags: <defaults>
</compile_context>

<pallas_src>
import functools
import math

import jax
import jax.numpy as jnp
from jax.experimental import pallas as pl
from jax.experimental.pallas import tpu as pltpu


def _bbox_kernel(cam_ref, out_ref, *, rel, bt):
    # cam_ref: (bt, H, W) float32 in VMEM; out_ref: (bt, 1, 4) float32 in SMEM.
    H, W = cam_ref.shape[1], cam_ref.shape[2]

    # Hoisted loop invariants (shared by every image in this block).
    iota_w = jax.lax.broadcasted_iota(jnp.int32, (1, W), 1)
    iota_h = jax.lax.broadcasted_iota(jnp.int32, (H, 1), 0)
    big = jnp.int32(1 << 30)
    neg = jnp.int32(-1)
    relf = jnp.float32(rel)
    inf = jnp.float32(jnp.inf)

    for b in range(bt):  # static unroll over the images in this block
        cam = cam_ref[b]                                   # (H, W)

        # Axis maxima double as both the global max and the
        # "any pixel in this row/col above threshold" predicates
        # (monotone: any_i(cam[i,j] >= t) == (max_i cam[i,j]) >= t).
        colmax = jnp.max(cam, axis=0, keepdims=True)       # (1, W)
        rowmax = jnp.max(cam, axis=1, keepdims=True)       # (H, 1)
        cmax = jnp.max(rowmax)                             # scalar
        cmin = jnp.min(cam)                                # scalar
        denom = cmax - cmin

        # Threshold in cam units; +inf for constant images -> empty mask.
        t = jnp.where(denom > 0.0, cmin + relf * denom, inf)

        col_any = colmax >= t                              # (1, W) bool
        row_any = rowmax >= t                              # (H, 1) bool

        x0 = jnp.min(jnp.where(col_any, iota_w, big))
        x1 = jnp.max(jnp.where(col_any, iota_w, neg)) + 1
        y0 = jnp.min(jnp.where(row_any, iota_h, big))
        y1 = jnp.max(jnp.where(row_any, iota_h, neg)) + 1
        has = x1 > 0                                       # empty mask <=> x1 == 0

        out_ref[b, 0, 0] = jnp.where(has, x0.astype(jnp.float32), jnp.float32(0.0))
        out_ref[b, 0, 1] = jnp.where(has, y0.astype(jnp.float32), jnp.float32(0.0))
        out_ref[b, 0, 2] = jnp.where(has, x1.astype(jnp.float32), jnp.float32(1.0))
        out_ref[b, 0, 3] = jnp.where(has, y1.astype(jnp.float32), jnp.float32(1.0))


def bbox_generator(cam, th):
    """cam: [B, 1, H, W] float32 -> [B, 1, 4] float32 (x0, y0, x1, y1)."""
    B, C, H, W = cam.shape
    assert C == 1, "BboxGenerator expects a single-channel CAM"
    th = float(th)
    # floor(th*gmax) matches python int() truncation only for non-negative th.
    assert 0.0 <= th <= 1.0, "th must be in [0, 1]"

    x = cam.reshape(B, H, W).astype(jnp.float32)

    # Images per grid step: amortize per-step pipeline overhead for small CAMs,
    # bounded by a ~4 MiB input block (double-buffered -> 8 MiB, under the
    # default scoped VMEM limit on v5e/v6e/v7x) and by unroll length.
    img_bytes = H * W * 4
    bt = max(1, min(B, 8, (4 * 1024 * 1024) // img_bytes))
    Bp = ((B + bt - 1) // bt) * bt
    if Bp != B:
        # Padded (constant-zero) images yield [0,0,1,1] and are sliced off below.
        x = jnp.pad(x, ((0, Bp - B), (0, 0), (0, 0)))

    rel = (math.floor(th * 255.0) + 1.0) / 255.0
    kernel = functools.partial(_bbox_kernel, rel=rel, bt=bt)

    out = pl.pallas_call(
        kernel,
        out_shape=jax.ShapeDtypeStruct((Bp, 1, 4), jnp.float32),
        grid=(Bp // bt,),
        in_specs=[pl.BlockSpec((bt, H, W), lambda g: (g, 0, 0))],
        out_specs=pl.BlockSpec((bt, 1, 4), lambda g: (g, 0, 0),
                               memory_space=pltpu.MemorySpace.SMEM),
        compiler_params=pltpu.CompilerParams(
            dimension_semantics=("parallel",)),
    )(x)
    return out[:B]


def _reference(cam, th):
    """Pure-JAX reference of the same (mask-bbox) semantics, vectorized."""
    B, C, H, W = cam.shape
    x = cam[:, 0].astype(jnp.float32)                      # (B, H, W)
    cmin = jnp.min(x, axis=(1, 2), keepdims=True)
    cmax = jnp.max(x, axis=(1, 2), keepdims=True)
    denom = cmax - cmin
    rel = (math.floor(float(th) * 255.0) + 1.0) / 255.0
    t = jnp.where(denom > 0.0, cmin + jnp.float32(rel) * denom,
                  jnp.float32(jnp.inf))
    mask = x >= t                                          # (B, H, W)

    rows = jnp.arange(H, dtype=jnp.int32)[None, :, None]
    cols = jnp.arange(W, dtype=jnp.int32)[None, None, :]
    big = jnp.int32(1 << 30)
    x0 = jnp.min(jnp.where(mask, cols, big), axis=(1, 2))
    y0 = jnp.min(jnp.where(mask, rows, big), axis=(1, 2))
    x1 = jnp.max(jnp.where(mask, cols, -1), axis=(1, 2)) + 1
    y1 = jnp.max(jnp.where(mask, rows, -1), axis=(1, 2)) + 1
    has = jnp.any(mask, axis=(1, 2))

    bbox = jnp.stack([jnp.where(has, x0, 0), jnp.where(has, y0, 0),
                      jnp.where(has, x1, 1), jnp.where(has, y1, 1)],
                     axis=-1).astype(jnp.float32)
    return bbox[:, None, :]


if __name__ == "__main__":
    key = jax.random.PRNGKey(0)
    B, C, H, W = 2, 1, 16, 16
    cam = jax.random.normal(key, (B, C, H, W), dtype=jnp.float32)
    # Make the second image constant to exercise the empty-mask -> [0,0,1,1] path.
    cam = cam.at[1].set(0.25)
    th = 0.5

    out = bbox_generator(cam, th)
    out = jax.block_until_ready(out)

    ref = _reference(cam, th)
    assert out.shape == (B, 1, 4), out.shape
    assert out.dtype == jnp.float32
    assert bool(jnp.allclose(out, ref)), (out, ref)
    print("KERNEL_OK")
</pallas_src>

<mosaic_0001>
module attributes {stable_mosaic.version = 11 : i64} {
  func.func @_bbox_kernel(%arg0: i32, %arg1: memref<2x16x16xf32, #tpu.memory_space<vmem>>, %arg2: memref<2x1x4xf32, #tpu.memory_space<smem>>) attributes {dimension_semantics = [#tpu.dimension_semantics<parallel>], iteration_bounds = array<i64: 1>, scalar_prefetch = 0 : i64, scratch_operands = 0 : i64, tpu.core_type = #tpu.core_type<tc>, window_params = [{transform_indices = @transform_0, window_bounds = array<i64: 2, 16, 16>}, {transform_indices = @transform_1, window_bounds = array<i64: 2, 1, 4>}]} {
    %0 = tpu.iota {dimensions = array<i32: 1>} : vector<1x16xi32>
    %1 = tpu.iota {dimensions = array<i32: 0>} : vector<16x1xi32>
    %c0 = arith.constant 0 : index
    %c0_0 = arith.constant 0 : index
    %c0_1 = arith.constant 0 : index
    %2 = vector.load %arg1[%c0, %c0_0, %c0_1] : memref<2x16x16xf32, #tpu.memory_space<vmem>>, vector<1x16x16xf32>
    %3 = vector.shape_cast %2 : vector<1x16x16xf32> to vector<16x16xf32>
    %cst = arith.constant dense<0xFF800000> : vector<16xf32>
    %4 = vector.multi_reduction <maximumf>, %3, %cst [0] : vector<16x16xf32> to vector<16xf32>
    %5 = vector.shape_cast %4 : vector<16xf32> to vector<1x16xf32>
    %cst_2 = arith.constant dense<0xFF800000> : vector<16xf32>
    %6 = vector.multi_reduction <maximumf>, %3, %cst_2 [1] : vector<16x16xf32> to vector<16xf32>
    %7 = vector.shape_cast %6 : vector<16xf32> to vector<16x1xf32>
    %8 = vector.shape_cast %7 : vector<16x1xf32> to vector<1x16x1xf32>
    %cst_3 = arith.constant dense<0xFF800000> : vector<1xf32>
    %9 = vector.multi_reduction <maximumf>, %8, %cst_3 [1, 2] : vector<1x16x1xf32> to vector<1xf32>
    %10 = vector.shape_cast %9 : vector<1xf32> to vector<1x1x1xf32>
    %11 = vector.extract %10[0, 0, 0] : f32 from vector<1x1x1xf32>
    %12 = vector.shape_cast %3 : vector<16x16xf32> to vector<1x16x16xf32>
    %cst_4 = arith.constant dense<0x7F800000> : vector<1xf32>
    %13 = vector.multi_reduction <minimumf>, %12, %cst_4 [1, 2] : vector<1x16x16xf32> to vector<1xf32>
    %14 = vector.shape_cast %13 : vector<1xf32> to vector<1x1x1xf32>
    %15 = vector.extract %14[0, 0, 0] : f32 from vector<1x1x1xf32>
    %16 = arith.subf %11, %15 : f32
    %cst_5 = arith.constant 0.000000e+00 : f32
    %17 = arith.cmpf ogt, %16, %cst_5 : f32
    %cst_6 = arith.constant 0.501960814 : f32
    %18 = arith.mulf %cst_6, %16 : f32
    %19 = arith.addf %15, %18 : f32
    %cst_7 = arith.constant 0x7F800000 : f32
    %20 = arith.select %17, %19, %cst_7 : f32
    %21 = vector.broadcast %20 : f32 to vector<1x16xf32>
    %22 = arith.cmpf oge, %5, %21 : vector<1x16xf32>
    %23 = vector.broadcast %20 : f32 to vector<16x1xf32>
    %24 = arith.cmpf oge, %7, %23 : vector<16x1xf32>
    %c1073741824_i32 = arith.constant 1073741824 : i32
    %25 = vector.broadcast %c1073741824_i32 : i32 to vector<1x16xi32>
    %26 = arith.select %22, %0, %25 : vector<1x16xi1>, vector<1x16xi32>
    %27 = vector.shape_cast %26 : vector<1x16xi32> to vector<1x1x16xi32>
    %cst_8 = arith.constant dense<2147483647> : vector<1xi32>
    %28 = vector.multi_reduction <minsi>, %27, %cst_8 [1, 2] : vector<1x1x16xi32> to vector<1xi32>
    %29 = vector.shape_cast %28 : vector<1xi32> to vector<1x1x1xi32>
    %30 = vector.extract %29[0, 0, 0] : i32 from vector<1x1x1xi32>
    %c-1_i32 = arith.constant -1 : i32
    %31 = vector.broadcast %c-1_i32 : i32 to vector<1x16xi32>
    %32 = arith.select %22, %0, %31 : vector<1x16xi1>, vector<1x16xi32>
    %33 = vector.shape_cast %32 : vector<1x16xi32> to vector<1x1x16xi32>
    %cst_9 = arith.constant dense<-2147483648> : vector<1xi32>
    %34 = vector.multi_reduction <maxsi>, %33, %cst_9 [1, 2] : vector<1x1x16xi32> to vector<1xi32>
    %35 = vector.shape_cast %34 : vector<1xi32> to vector<1x1x1xi32>
    %36 = vector.extract %35[0, 0, 0] : i32 from vector<1x1x1xi32>
    %c1_i32 = arith.constant 1 : i32
    %37 = arith.addi %36, %c1_i32 : i32
    %c1073741824_i32_10 = arith.constant 1073741824 : i32
    %38 = vector.broadcast %c1073741824_i32_10 : i32 to vector<16x1xi32>
    %39 = arith.select %24, %1, %38 : vector<16x1xi1>, vector<16x1xi32>
    %40 = vector.shape_cast %39 : vector<16x1xi32> to vector<1x16x1xi32>
    %cst_11 = arith.constant dense<2147483647> : vector<1xi32>
    %41 = vector.multi_reduction <minsi>, %40, %cst_11 [1, 2] : vector<1x16x1xi32> to vector<1xi32>
    %42 = vector.shape_cast %41 : vector<1xi32> to vector<1x1x1xi32>
    %43 = vector.extract %42[0, 0, 0] : i32 from vector<1x1x1xi32>
    %c-1_i32_12 = arith.constant -1 : i32
    %44 = vector.broadcast %c-1_i32_12 : i32 to vector<16x1xi32>
    %45 = arith.select %24, %1, %44 : vector<16x1xi1>, vector<16x1xi32>
    %46 = vector.shape_cast %45 : vector<16x1xi32> to vector<1x16x1xi32>
    %cst_13 = arith.constant dense<-2147483648> : vector<1xi32>
    %47 = vector.multi_reduction <maxsi>, %46, %cst_13 [1, 2] : vector<1x16x1xi32> to vector<1xi32>
    %48 = vector.shape_cast %47 : vector<1xi32> to vector<1x1x1xi32>
    %49 = vector.extract %48[0, 0, 0] : i32 from vector<1x1x1xi32>
    %c1_i32_14 = arith.constant 1 : i32
    %50 = arith.addi %49, %c1_i32_14 : i32
    %c0_i32 = arith.constant 0 : i32
    %51 = arith.cmpi sgt, %37, %c0_i32 : i32
    %52 = arith.sitofp %30 : i32 to f32
    %cst_15 = arith.constant 0.000000e+00 : f32
    %53 = arith.select %51, %52, %cst_15 : f32
    %c0_16 = arith.constant 0 : index
    %c0_17 = arith.constant 0 : index
    %c0_18 = arith.constant 0 : index
    %54 = memref.load %arg2[%c0_16, %c0_17, %c0_18] : memref<2x1x4xf32, #tpu.memory_space<smem>>
    memref.store %53, %arg2[%c0_16, %c0_17, %c0_18] : memref<2x1x4xf32, #tpu.memory_space<smem>>
    %55 = arith.sitofp %43 : i32 to f32
    %cst_19 = arith.constant 0.000000e+00 : f32
    %56 = arith.select %51, %55, %cst_19 : f32
    %c0_20 = arith.constant 0 : index
    %c0_21 = arith.constant 0 : index
    %c1 = arith.constant 1 : index
    %57 = memref.load %arg2[%c0_20, %c0_21, %c1] : memref<2x1x4xf32, #tpu.memory_space<smem>>
    memref.store %56, %arg2[%c0_20, %c0_21, %c1] : memref<2x1x4xf32, #tpu.memory_space<smem>>
    %58 = arith.sitofp %37 : i32 to f32
    %cst_22 = arith.constant 1.000000e+00 : f32
    %59 = arith.select %51, %58, %cst_22 : f32
    %c0_23 = arith.constant 0 : index
    %c0_24 = arith.constant 0 : index
    %c2 = arith.constant 2 : index
    %60 = memref.load %arg2[%c0_23, %c0_24, %c2] : memref<2x1x4xf32, #tpu.memory_space<smem>>
    memref.store %59, %arg2[%c0_23, %c0_24, %c2] : memref<2x1x4xf32, #tpu.memory_space<smem>>
    %61 = arith.sitofp %50 : i32 to f32
    %cst_25 = arith.constant 1.000000e+00 : f32
    %62 = arith.select %51, %61, %cst_25 : f32
    %c0_26 = arith.constant 0 : index
    %c0_27 = arith.constant 0 : index
    %c3 = arith.constant 3 : index
    %63 = memref.load %arg2[%c0_26, %c0_27, %c3] : memref<2x1x4xf32, #tpu.memory_space<smem>>
    memref.store %62, %arg2[%c0_26, %c0_27, %c3] : memref<2x1x4xf32, #tpu.memory_space<smem>>
    %c1_28 = arith.constant 1 : index
    %c0_29 = arith.constant 0 : index
    %c0_30 = arith.constant 0 : index
    %64 = vector.load %arg1[%c1_28, %c0_29, %c0_30] : memref<2x16x16xf32, #tpu.memory_space<vmem>>, vector<1x16x16xf32>
    %65 = vector.shape_cast %64 : vector<1x16x16xf32> to vector<16x16xf32>
    %cst_31 = arith.constant dense<0xFF800000> : vector<16xf32>
    %66 = vector.multi_reduction <maximumf>, %65, %cst_31 [0] : vector<16x16xf32> to vector<16xf32>
    %67 = vector.shape_cast %66 : vector<16xf32> to vector<1x16xf32>
    %cst_32 = arith.constant dense<0xFF800000> : vector<16xf32>
    %68 = vector.multi_reduction <maximumf>, %65, %cst_32 [1] : vector<16x16xf32> to vector<16xf32>
    %69 = vector.shape_cast %68 : vector<16xf32> to vector<16x1xf32>
    %70 = vector.shape_cast %69 : vector<16x1xf32> to vector<1x16x1xf32>
    %cst_33 = arith.constant dense<0xFF800000> : vector<1xf32>
    %71 = vector.multi_reduction <maximumf>, %70, %cst_33 [1, 2] : vector<1x16x1xf32> to vector<1xf32>
    %72 = vector.shape_cast %71 : vector<1xf32> to vector<1x1x1xf32>
    %73 = vector.extract %72[0, 0, 0] : f32 from vector<1x1x1xf32>
    %74 = vector.shape_cast %65 : vector<16x16xf32> to vector<1x16x16xf32>
    %cst_34 = arith.constant dense<0x7F800000> : vector<1xf32>
    %75 = vector.multi_reduction <minimumf>, %74, %cst_34 [1, 2] : vector<1x16x16xf32> to vector<1xf32>
    %76 = vector.shape_cast %75 : vector<1xf32> to vector<1x1x1xf32>
    %77 = vector.extract %76[0, 0, 0] : f32 from vector<1x1x1xf32>
    %78 = arith.subf %73, %77 : f32
    %cst_35 = arith.constant 0.000000e+00 : f32
    %79 = arith.cmpf ogt, %78, %cst_35 : f32
    %cst_36 = arith.constant 0.501960814 : f32
    %80 = arith.mulf %cst_36, %78 : f32
    %81 = arith.addf %77, %80 : f32
    %cst_37 = arith.constant 0x7F800000 : f32
    %82 = arith.select %79, %81, %cst_37 : f32
    %83 = vector.broadcast %82 : f32 to vector<1x16xf32>
    %84 = arith.cmpf oge, %67, %83 : vector<1x16xf32>
    %85 = vector.broadcast %82 : f32 to vector<16x1xf32>
    %86 = arith.cmpf oge, %69, %85 : vector<16x1xf32>
    %c1073741824_i32_38 = arith.constant 1073741824 : i32
    %87 = vector.broadcast %c1073741824_i32_38 : i32 to vector<1x16xi32>
    %88 = arith.select %84, %0, %87 : vector<1x16xi1>, vector<1x16xi32>
    %89 = vector.shape_cast %88 : vector<1x16xi32> to vector<1x1x16xi32>
    %cst_39 = arith.constant dense<2147483647> : vector<1xi32>
    %90 = vector.multi_reduction <minsi>, %89, %cst_39 [1, 2] : vector<1x1x16xi32> to vector<1xi32>
    %91 = vector.shape_cast %90 : vector<1xi32> to vector<1x1x1xi32>
    %92 = vector.extract %91[0, 0, 0] : i32 from vector<1x1x1xi32>
    %c-1_i32_40 = arith.constant -1 : i32
    %93 = vector.broadcast %c-1_i32_40 : i32 to vector<1x16xi32>
    %94 = arith.select %84, %0, %93 : vector<1x16xi1>, vector<1x16xi32>
    %95 = vector.shape_cast %94 : vector<1x16xi32> to vector<1x1x16xi32>
    %cst_41 = arith.constant dense<-2147483648> : vector<1xi32>
    %96 = vector.multi_reduction <maxsi>, %95, %cst_41 [1, 2] : vector<1x1x16xi32> to vector<1xi32>
    %97 = vector.shape_cast %96 : vector<1xi32> to vector<1x1x1xi32>
    %98 = vector.extract %97[0, 0, 0] : i32 from vector<1x1x1xi32>
    %c1_i32_42 = arith.constant 1 : i32
    %99 = arith.addi %98, %c1_i32_42 : i32
    %c1073741824_i32_43 = arith.constant 1073741824 : i32
    %100 = vector.broadcast %c1073741824_i32_43 : i32 to vector<16x1xi32>
    %101 = arith.select %86, %1, %100 : vector<16x1xi1>, vector<16x1xi32>
    %102 = vector.shape_cast %101 : vector<16x1xi32> to vector<1x16x1xi32>
    %cst_44 = arith.constant dense<2147483647> : vector<1xi32>
    %103 = vector.multi_reduction <minsi>, %102, %cst_44 [1, 2] : vector<1x16x1xi32> to vector<1xi32>
    %104 = vector.shape_cast %103 : vector<1xi32> to vector<1x1x1xi32>
    %105 = vector.extract %104[0, 0, 0] : i32 from vector<1x1x1xi32>
    %c-1_i32_45 = arith.constant -1 : i32
    %106 = vector.broadcast %c-1_i32_45 : i32 to vector<16x1xi32>
    %107 = arith.select %86, %1, %106 : vector<16x1xi1>, vector<16x1xi32>
    %108 = vector.shape_cast %107 : vector<16x1xi32> to vector<1x16x1xi32>
    %cst_46 = arith.constant dense<-2147483648> : vector<1xi32>
    %109 = vector.multi_reduction <maxsi>, %108, %cst_46 [1, 2] : vector<1x16x1xi32> to vector<1xi32>
    %110 = vector.shape_cast %109 : vector<1xi32> to vector<1x1x1xi32>
    %111 = vector.extract %110[0, 0, 0] : i32 from vector<1x1x1xi32>
    %c1_i32_47 = arith.constant 1 : i32
    %112 = arith.addi %111, %c1_i32_47 : i32
    %c0_i32_48 = arith.constant 0 : i32
    %113 = arith.cmpi sgt, %99, %c0_i32_48 : i32
    %114 = arith.sitofp %92 : i32 to f32
    %cst_49 = arith.constant 0.000000e+00 : f32
    %115 = arith.select %113, %114, %cst_49 : f32
    %c1_50 = arith.constant 1 : index
    %c0_51 = arith.constant 0 : index
    %c0_52 = arith.constant 0 : index
    %116 = memref.load %arg2[%c1_50, %c0_51, %c0_52] : memref<2x1x4xf32, #tpu.memory_space<smem>>
    memref.store %115, %arg2[%c1_50, %c0_51, %c0_52] : memref<2x1x4xf32, #tpu.memory_space<smem>>
    %117 = arith.sitofp %105 : i32 to f32
    %cst_53 = arith.constant 0.000000e+00 : f32
    %118 = arith.select %113, %117, %cst_53 : f32
    %c1_54 = arith.constant 1 : index
    %c0_55 = arith.constant 0 : index
    %c1_56 = arith.constant 1 : index
    %119 = memref.load %arg2[%c1_54, %c0_55, %c1_56] : memref<2x1x4xf32, #tpu.memory_space<smem>>
    memref.store %118, %arg2[%c1_54, %c0_55, %c1_56] : memref<2x1x4xf32, #tpu.memory_space<smem>>
    %120 = arith.sitofp %99 : i32 to f32
    %cst_57 = arith.constant 1.000000e+00 : f32
    %121 = arith.select %113, %120, %cst_57 : f32
    %c1_58 = arith.constant 1 : index
    %c0_59 = arith.constant 0 : index
    %c2_60 = arith.constant 2 : index
    %122 = memref.load %arg2[%c1_58, %c0_59, %c2_60] : memref<2x1x4xf32, #tpu.memory_space<smem>>
    memref.store %121, %arg2[%c1_58, %c0_59, %c2_60] : memref<2x1x4xf32, #tpu.memory_space<smem>>
    %123 = arith.sitofp %112 : i32 to f32
    %cst_61 = arith.constant 1.000000e+00 : f32
    %124 = arith.select %113, %123, %cst_61 : f32
    %c1_62 = arith.constant 1 : index
    %c0_63 = arith.constant 0 : index
    %c3_64 = arith.constant 3 : index
    %125 = memref.load %arg2[%c1_62, %c0_63, %c3_64] : memref<2x1x4xf32, #tpu.memory_space<smem>>
    memref.store %124, %arg2[%c1_62, %c0_63, %c3_64] : memref<2x1x4xf32, #tpu.memory_space<smem>>
    return
  }
  func.func @transform_0(%arg0: i32) -> (i32, i32, i32) {
    %c0_i32 = arith.constant 0 : i32
    %c0_i32_0 = arith.constant 0 : i32
    %c0_i32_1 = arith.constant 0 : i32
    return %arg0, %c0_i32, %c0_i32_0 : i32, i32, i32
  }
  func.func @transform_1(%arg0: i32) -> (i32, i32, i32) {
    %c0_i32 = arith.constant 0 : i32
    %c0_i32_0 = arith.constant 0 : i32
    %c0_i32_1 = arith.constant 0 : i32
    return %arg0, %c0_i32, %c0_i32_0 : i32, i32, i32
  }
}

</mosaic_0001>

<bundles_post_ra>
// kernel: tpu_custom_call.1
= control target key start
LH: loop header
LB: loop body
LE: loop exit
PB: predicated region body
PF: predicated region fallthrough
CT: control target
= control target key end

     0   :  { %6 = vsyncpa [#allocation3], 0  ;;  %s469_s0 = inlined_call_operand.hbm [shape: f32[2,16,16], index: 0, kind: input, shape index: {}]   ;;  %s470_s1 = inlined_call_operand.hbm [shape: f32[2,1,4], index: 1, kind: output, shape index: {}]  }
   0x1   :  { %7 = vsyncpa [#allocation4], 0  ;;  %s362_s6 = smov [#allocation2]   ;;  %s326_s10 = scalar_lea.hbm %s469_s0, 512 }
   0x2   :  { %s13_s7 = sshll.u32 %s362_s6, 4  ;;  %p327_p0 = scmp.ne.s32.totalorder %s469_s0, %s326_s10  ;;  %s14_s7 = int_to_ptr.vmem [resolvable:$true] %s13_s7 }
   0x3   :  { %p330_p1 = scmp.lt.u32.totalorder %s326_s10, %s469_s0 }
   0x5   :  { %p332_p2 = pnand %p330_p1, %p327_p0 }
   0x7   :  { %335 = shalt.err (!%p332_p2)
}
   0x8   :  { %s336_s15 = scalar_lea.vmem %s14_s7, 512  ;;  %p341_p4 = scmp.lt.s32.totalorder %s14_s7, %s14_s7 }
   0x9   :  { %p337_p3 = scmp.ne.s32.totalorder %s14_s7, %s336_s15  ;;  %p342_p5 = scmp.lt.s32.totalorder %s336_s15, %s336_s15 }
   0xb   :  { %p343_p6 = por %p342_p5, %p341_p4 }
   0xd   :  { %p344_p7 = pnand %p343_p6, %p337_p3 }
   0xf   :  { %347 = shalt.err (!%p344_p7)
}
  0x10   :  { %s363_s16 = smov 128   ;;  %s364_s17 = smov 8  }
  0x11   :  { %19 = dma.hbm_to_vmem [thread:$0]  %s469_s0, 512, %s14_s7, [#allocation3], %s363_s16, %s363_s16, %s364_s17  }
  0x12   :  { %358 = dma.done.wait [#allocation3], 512  }
  0x13   :  { %359 = vsyncadd [#allocation3], 4294966784  ;;  %vm30_vm0 = vcmask 130048   ;;  %v28_v0 = vld [vmem:[#allocation2] sm:$0xff]  ;;  %v29_v1 = vld [vmem:[#allocation2 + $0x8] sm:$0xff]  ;;  %v23_v29 = vlaneseq }
  0x14   :  { %v31_v2 = vsel %vm30_vm0, %v28_v0, -inf  ;;  %v52_v3 = vsel %vm30_vm0, %v28_v0, inf  ;;  %v53_v4 = vsel %vm30_vm0, %v29_v1, inf  ;;  %v32_v5 = vsel %vm30_vm0, %v29_v1, -inf  ;;  %v156_v41 = vld [vmem:[#allocation2 + $0x18] sm:$0xff]  ;;  %v155_v42 = vld [vmem:[#allocation2 + $0x10] sm:$0xff] }
  0x15   :  { %40 = vmax.xlane.f32.xlu0 %v31_v2  ;;  %v54_v6 = vmin.f32 %v52_v3, %v53_v4  ;;  %v33_v7 = vmax.f32 %v31_v2, %v32_v5  ;;  %v400_v31 = vand.u32 127, %v23_v29  ;;  %v407_v43 = vsel %vm30_vm0, %v156_v41, -inf }
  0x16   :  { %v410_v44 = vsel %vm30_vm0, %v155_v42, -inf  ;;  %v178_v45 = vsel %vm30_vm0, %v155_v42, inf  ;;  %v179_v46 = vsel %vm30_vm0, %v156_v41, inf  ;;  %v416_v56 = vshrl.u32 %v23_v29, 7 }
  0x17   :  { %55 = vmin.xlane.f32.xlu1 %v54_v6  ;;  %v34_v24 = vrot.slane %v33_v7, 4  ;;  %v180_v47 = vmin.f32 %v178_v45, %v179_v46 }
  0x18   :  { %v419_v57 = vadd.s32 8, %v416_v56 }
  0x19   :  { %42 = vmax.xlane.f32.xlu0 %v32_v5  ;;  %v35_v25 = vmax.f32 %v33_v7, %v34_v24 }
  0x1b   :  { %v36_v26 = vrot.slane %v35_v25, 2 }
  0x1d   :  { %v37_v27 = vmax.f32 %v35_v25, %v36_v26 }
  0x1f   :  { %v38_v28 = vrot.slane %v37_v27, 1 }
  0x21   :  { %v39_v30 = vmax.f32 %v37_v27, %v38_v28 }
  0xa2   :  { %v394_v8 = vpop.xlane.xlu0 %40 }
  0xa4   :  { %v56_v9 = vpop.xlane.xlu1 %55 }
  0xa5   :  { %v57_v10 = vrot.slane %v56_v9, 4 }
  0xa6   :  { %v396_v11 = vpop.xlane.xlu0 %42 }
  0xa7   :  { %v58_v12 = vmin.f32 %v56_v9, %v57_v10  ;;  %v44_v13 = vmax.f32 %v394_v8, %v396_v11 }
  0xa9   :  { %v59_v14 = vrot.slane %v58_v12, 2  ;;  %v45_v15 = vrot.slane %v44_v13, 4 }
  0xab   :  { %v46_v16 = vmax.f32 %v44_v13, %v45_v15  ;;  %v60_v17 = vmin.f32 %v58_v12, %v59_v14 }
  0xad   :  { %v47_v18 = vrot.slane %v46_v16, 2  ;;  %v61_v20 = vrot.slane %v60_v17, 1 }
  0xaf   :  { %v48_v19 = vmax.f32 %v46_v16, %v47_v18  ;;  %v62_v23 = vmin.f32 %v60_v17, %v61_v20 }
  0xb1   :  { %v49_v21 = vrot.slane %v48_v19, 1 }
  0xb3   :  { %v50_v22 = vmax.f32 %v48_v19, %v49_v21 }
  0xb5   :  { %296 = vpush %v50_v22 }
  0xb6   :  { %298 = vpush %v62_v23 }
  0xe6   :  { %s297_s0 = spop %296 }
  0xe7   :  { %s299_s20 = spop %298 }
  0xe8   :  { %s64_s21 = ssub.f32 %s297_s0, %s299_s20 }
  0xea   :  { %s66_s22 = smul.f32 0.5019608, %s64_s21  ;;  %p65_p8 = scmp.gt.f32.partialorder %s64_s21, 0.0 }
  0xec   :  { %s67_s23 = sadd.f32 %s299_s20, %s66_s22  ;;  %s348_s22 = scalar_lea.hbm %s470_s1, 32 }
  0xed   :  { %p349_p12 = scmp.ne.s32.totalorder %s470_s1, %s348_s22  ;;  %p352_p13 = scmp.lt.u32.totalorder %s348_s22, %s470_s1 }
  0xee   :  { %s473_s23 = smov (!%p65_p8, %s67_s23), inf }
  0xef   :  { %v69_v32 = vstv %s473_s23  ;;  %p354_p0 = pnand %p352_p13, %p349_p12 }
  0xf0   :  { %vm70_vm1 = vcmp.ge.f32.partialorder %v39_v30, %v69_v32  ;;  %vm71_vm4 = vcmp.ge.f32.partialorder %v394_v8, %v69_v32  ;;  %vm72_vm5 = vcmp.ge.f32.partialorder %v396_v11, %v69_v32 }
  0xf1   :  { %v90_v33 = vsel %vm70_vm1, %v400_v31, 4294967295  ;;  %v73_v34 = vsel %vm70_vm1, %v400_v31, 1073741824  ;;  %v108_v58 = vsel %vm71_vm4, %v416_v56, 1073741824  ;;  %v109_v59 = vsel %vm72_vm5, %v419_v57, 1073741824 }
  0xf2   :  { %v91_v35 = vsel %vm30_vm0, %v90_v33, 2147483648  ;;  %v74_v36 = vsel %vm30_vm0, %v73_v34, 2147483647  ;;  %v122_v60 = vsel %vm71_vm4, %v416_v56, 4294967295  ;;  %v123_v61 = vsel %vm72_vm5, %v419_v57, 4294967295 }
  0xf3   :  { %v93_v37 = vshra.s32 %v91_v35, 16  ;;  %v76_v38 = vshra.s32 %v74_v36, 16  ;;  %v92_v48 = vand.u32 65535, %v91_v35  ;;  %v75_v49 = vand.u32 65535, %v74_v36 }
  0xf4   :  { %vm110_vm6 = vcmp.lt.s32.totalorder %v108_v58, %v109_v59  ;;  %vm124_vm7 = vcmp.gt.s32.totalorder %v122_v60, %v123_v61 }
  0xf5   :  { %v95_v39 = vcvt.s32.f32 %v93_v37  ;;  %v78_v40 = vcvt.s32.f32 %v76_v38  ;;  %v94_v52 = vcvt.s32.f32 %v92_v48  ;;  %v77_v53 = vcvt.s32.f32 %v75_v49 }
  0xf6   :  { %v111_v62 = vsel %vm110_vm6, %v108_v58, %v109_v59  ;;  %v125_v63 = vsel %vm124_vm7, %v122_v60, %v123_v61 }
  0xf7   :  { %96 = vmax.xlane.f32.xlu0 %v95_v39  ;;  %79 = vmin.xlane.f32.xlu1 %v78_v40  ;;  %v112_v1 = vrot.slane %v111_v62, 4  ;;  %v126_v3 = vrot.slane %v125_v63, 4 }
  0xf9   :  { %vm113_vm8 = vcmp.lt.s32.totalorder %v111_v62, %v112_v1  ;;  %vm127_vm9 = vcmp.gt.s32.totalorder %v125_v63, %v126_v3 }
  0xfa   :  { %v114_v6 = vsel %vm113_vm8, %v111_v62, %v112_v1  ;;  %v128_v8 = vsel %vm127_vm9, %v125_v63, %v126_v3 }
  0xfb   :  { %168 = vmax.xlane.f32.xlu0 %v407_v43  ;;  %166 = vmax.xlane.f32.xlu1 %v410_v44  ;;  %v115_v10 = vrot.slane %v114_v6, 2  ;;  %v129_v11 = vrot.slane %v128_v8, 2 }
  0xfd   :  { %vm116_vm10 = vcmp.lt.s32.totalorder %v114_v6, %v115_v10  ;;  %vm130_vm11 = vcmp.gt.s32.totalorder %v128_v8, %v129_v11 }
  0xfe   :  { %v117_v16 = vsel %vm116_vm10, %v114_v6, %v115_v10  ;;  %v131_v19 = vsel %vm130_vm11, %v128_v8, %v129_v11 }
  0xff   :  { %181 = vmin.xlane.f32.xlu1 %v180_v47  ;;  %v118_v20 = vrot.slane %v117_v16, 1  ;;  %v132_v24 = vrot.slane %v131_v19, 1 }
 0x101   :  { %vm119_vm12 = vcmp.lt.s32.totalorder %v117_v16, %v118_v20  ;;  %vm133_vm13 = vcmp.gt.s32.totalorder %v131_v19, %v132_v24 }
 0x102   :  { %v120_v35 = vsel %vm119_vm12, %v117_v16, %v118_v20  ;;  %v134_v36 = vsel %vm133_vm13, %v131_v19, %v132_v24 }
 0x184   :  { %v97_v50 = vpop.xlane.xlu0 %96  ;;  %v80_v51 = vpop.xlane.xlu1 %79 }
 0x185   :  { %vm98_vm2 = vcmp.eq.f32.partialorder %v95_v39, %v97_v50  ;;  %vm81_vm3 = vcmp.eq.f32.partialorder %v78_v40, %v80_v51  ;;  %v103_v17 = vcvt.f32.s32 %v97_v50  ;;  %v86_v18 = vcvt.f32.s32 %v80_v51 }
 0x186   :  { %v99_v54 = vsel %vm98_vm2, %v94_v52, -inf  ;;  %v82_v55 = vsel %vm81_vm3, %v77_v53, inf  ;;  %v159_v39 = vmax.f32 %v410_v44, %v407_v43 }
 0x187   :  { %100 = vmax.xlane.f32.xlu1 %v99_v54  ;;  %83 = vmin.xlane.f32.xlu0 %v82_v55  ;;  %v104_v26 = vshll.u32 %v103_v17, 16  ;;  %v87_v27 = vshll.u32 %v86_v18, 16 }
 0x188   :  { %v427_v0 = vpop.xlane.xlu1 %166  ;;  %v429_v2 = vpop.xlane.xlu0 %168  ;;  %v160_v40 = vrot.slane %v159_v39, 4 }
 0x189   :  { %v170_v4 = vmax.f32 %v427_v0, %v429_v2 }
 0x18a   :  { %v161_v41 = vmax.f32 %v159_v39, %v160_v40 }
 0x18b   :  { %v171_v7 = vrot.slane %v170_v4, 4 }
 0x18c   :  { %v182_v5 = vpop.xlane.xlu1 %181  ;;  %v162_v42 = vrot.slane %v161_v41, 2 }
 0x18d   :  { %v183_v9 = vrot.slane %v182_v5, 4  ;;  %v172_v12 = vmax.f32 %v170_v4, %v171_v7 }
 0x18e   :  { %v163_v43 = vmax.f32 %v161_v41, %v162_v42 }
 0x18f   :  { %v184_v13 = vmin.f32 %v182_v5, %v183_v9  ;;  %v173_v14 = vrot.slane %v172_v12, 2 }
 0x190   :  { %v164_v44 = vrot.slane %v163_v43, 1 }
 0x191   :  { %v185_v15 = vrot.slane %v184_v13, 2  ;;  %v174_v21 = vmax.f32 %v172_v12, %v173_v14 }
 0x192   :  { %v165_v45 = vmax.f32 %v163_v43, %v164_v44 }
 0x193   :  { %v186_v25 = vmin.f32 %v184_v13, %v185_v15  ;;  %v175_v33 = vrot.slane %v174_v21, 1 }
 0x195   :  { %v187_v34 = vrot.slane %v186_v25, 1  ;;  %v176_v37 = vmax.f32 %v174_v21, %v175_v33 }
 0x197   :  { %v188_v38 = vmin.f32 %v186_v25, %v187_v34 }
 0x214   :  { %v101_v22 = vpop.xlane.xlu1 %100  ;;  %v84_v23 = vpop.xlane.xlu0 %83 }
 0x215   :  { %v102_v28 = vcvt.f32.s32 %v101_v22  ;;  %v85_v29 = vcvt.f32.s32 %v84_v23 }
 0x217   :  { %v88_v30 = vadd.s32 %v87_v27, %v85_v29  ;;  %v105_v32 = vadd.s32 %v104_v26, %v102_v28 }
 0x219   :  { %300 = vpush %v88_v30 }
 0x21a   :  { %302 = vpush %v105_v32 }
 0x21b   :  { %304 = vpush %v120_v35 }
 0x21c   :  { %306 = vpush %v134_v36 }
 0x21d   :  { %308 = vpush %v176_v37 }
 0x21e   :  { %310 = vpush %v188_v38 }
 0x24a   :  { %s301_s24 = spop %300 }
 0x24b   :  { %s138_s25 = scvt.s32.f32 %s301_s24  ;;  %s303_s26 = spop %302 }
 0x24c   :  { %s107_s27 = sadd.s32 1, %s303_s26  ;;  %s305_s28 = spop %304 }
 0x24d   :  { %p435_p9 = scmp.gt.s32.totalorder %s107_s27, 0  ;;  %s146_s30 = scvt.s32.f32 %s107_s27 }
 0x24e   :  { %s142_s2 = scvt.s32.f32 %s305_s28  ;;  %s307_s3 = spop %306 }
 0x24f   :  { %s475_s25 = smov (!%p435_p9, %s138_s25), 0.0  ;;  %s477_s30 = smov (!%p435_p9, %s146_s30), 1.0 }
 0x250   :  { %141 = sst [smem:[#allocation5]] %s475_s25  ;;  %s136_s4 = sadd.s32 1, %s307_s3 }
 0x251   :  { %149 = sst [smem:[#allocation5 + $0x2]] %s477_s30  ;;  %s150_s5 = scvt.s32.f32 %s136_s4 }
 0x252   :  { %s479_s2 = smov (!%p435_p9, %s142_s2), 0.0  ;;  %s309_s6 = spop %308 }
 0x253   :  { %s481_s5 = smov (!%p435_p9, %s150_s5), 1.0  ;;  %145 = sst [smem:[#allocation5 + $0x1]] %s479_s2 }
 0x254   :  { %153 = sst [smem:[#allocation5 + $0x3]] %s481_s5  ;;  %s311_s7 = spop %310 }
 0x255   :  { %s190_s8 = ssub.f32 %s309_s6, %s311_s7 }
 0x257   :  { %s192_s9 = smul.f32 0.5019608, %s190_s8  ;;  %p191_p10 = scmp.gt.f32.partialorder %s190_s8, 0.0 }
 0x259   :  { %s193_s10 = sadd.f32 %s311_s7, %s192_s9 }
 0x25b   :  { %s483_s10 = smov (!%p191_p10, %s193_s10), inf }
 0x25c   :  { %v195_v46 = vstv %s483_s10 }
 0x25d   :  { %vm196_vm14 = vcmp.ge.f32.partialorder %v165_v45, %v195_v46  ;;  %vm198_vm2 = vcmp.ge.f32.partialorder %v429_v2, %v195_v46 }
 0x25e   :  { %v216_v47 = vsel %vm196_vm14, %v400_v31, 4294967295  ;;  %v199_v48 = vsel %vm196_vm14, %v400_v31, 1073741824  ;;  %v235_v3 = vsel %vm198_vm2, %v419_v57, 1073741824  ;;  %v249_v5 = vsel %vm198_vm2, %v419_v57, 4294967295 }
 0x25f   :  { %v217_v49 = vsel %vm30_vm0, %v216_v47, 2147483648  ;;  %v200_v50 = vsel %vm30_vm0, %v199_v48, 2147483647  ;;  %vm197_vm0 = vcmp.ge.f32.partialorder %v427_v0, %v195_v46 }
 0x260   :  { %v219_v51 = vshra.s32 %v217_v49, 16  ;;  %v202_v52 = vshra.s32 %v200_v50, 16  ;;  %v218_v55 = vand.u32 65535, %v217_v49  ;;  %v201_v58 = vand.u32 65535, %v200_v50 }
 0x261   :  { %v234_v1 = vsel %vm197_vm0, %v416_v56, 1073741824  ;;  %v248_v4 = vsel %vm197_vm0, %v416_v56, 4294967295 }
 0x262   :  { %v221_v53 = vcvt.s32.f32 %v219_v51  ;;  %v204_v54 = vcvt.s32.f32 %v202_v52  ;;  %v220_v61 = vcvt.s32.f32 %v218_v55  ;;  %v203_v62 = vcvt.s32.f32 %v201_v58 }
 0x263   :  { %vm236_vm3 = vcmp.lt.s32.totalorder %v234_v1, %v235_v3  ;;  %vm250_vm4 = vcmp.gt.s32.totalorder %v248_v4, %v249_v5 }
 0x264   :  { %222 = vmax.xlane.f32.xlu1 %v221_v53  ;;  %205 = vmin.xlane.f32.xlu0 %v204_v54  ;;  %v237_v6 = vsel %vm236_vm3, %v234_v1, %v235_v3  ;;  %v251_v7 = vsel %vm250_vm4, %v248_v4, %v249_v5 }
 0x265   :  { %v238_v8 = vrot.slane %v237_v6, 4  ;;  %v252_v9 = vrot.slane %v251_v7, 4 }
 0x267   :  { %vm239_vm5 = vcmp.lt.s32.totalorder %v237_v6, %v238_v8  ;;  %vm253_vm6 = vcmp.gt.s32.totalorder %v251_v7, %v252_v9 }
 0x268   :  { %v240_v10 = vsel %vm239_vm5, %v237_v6, %v238_v8  ;;  %v254_v0 = vsel %vm253_vm6, %v251_v7, %v252_v9 }
 0x269   :  { %v241_v11 = vrot.slane %v240_v10, 2  ;;  %v255_v2 = vrot.slane %v254_v0, 2 }
 0x26b   :  { %vm242_vm7 = vcmp.lt.s32.totalorder %v240_v10, %v241_v11  ;;  %vm256_vm8 = vcmp.gt.s32.totalorder %v254_v0, %v255_v2 }
 0x26c   :  { %v243_v12 = vsel %vm242_vm7, %v240_v10, %v241_v11  ;;  %v257_v56 = vsel %vm256_vm8, %v254_v0, %v255_v2 }
 0x26d   :  { %v244_v15 = vrot.slane %v243_v12, 1  ;;  %v258_v17 = vrot.slane %v257_v56, 1 }
 0x26f   :  { %vm245_vm9 = vcmp.lt.s32.totalorder %v243_v12, %v244_v15  ;;  %vm259_vm10 = vcmp.gt.s32.totalorder %v257_v56, %v258_v17 }
 0x270   :  { %v246_v24 = vsel %vm245_vm9, %v243_v12, %v244_v15  ;;  %v260_v25 = vsel %vm259_vm10, %v257_v56, %v258_v17 }
 0x2f1   :  { %v223_v59 = vpop.xlane.xlu1 %222  ;;  %v206_v60 = vpop.xlane.xlu0 %205 }
 0x2f2   :  { %vm224_vm15 = vcmp.eq.f32.partialorder %v221_v53, %v223_v59  ;;  %vm207_vm1 = vcmp.eq.f32.partialorder %v204_v54, %v206_v60  ;;  %v229_v13 = vcvt.f32.s32 %v223_v59  ;;  %v212_v14 = vcvt.f32.s32 %v206_v60 }
 0x2f3   :  { %v225_v63 = vsel %vm224_vm15, %v220_v61, -inf  ;;  %v208_v31 = vsel %vm207_vm1, %v203_v62, inf }
 0x2f4   :  { %226 = vmax.xlane.f32.xlu1 %v225_v63  ;;  %209 = vmin.xlane.f32.xlu0 %v208_v31  ;;  %v230_v18 = vshll.u32 %v229_v13, 16  ;;  %v213_v19 = vshll.u32 %v212_v14, 16 }
 0x381   :  { %v227_v57 = vpop.xlane.xlu1 %226  ;;  %v210_v16 = vpop.xlane.xlu0 %209 }
 0x382   :  { %v228_v20 = vcvt.f32.s32 %v227_v57  ;;  %v211_v21 = vcvt.f32.s32 %v210_v16 }
 0x384   :  { %v214_v22 = vadd.s32 %v213_v19, %v211_v21  ;;  %v231_v23 = vadd.s32 %v230_v18, %v228_v20 }
 0x386   :  { %312 = vpush %v214_v22 }
 0x387   :  { %314 = vpush %v231_v23 }
 0x388   :  { %316 = vpush %v246_v24 }
 0x389   :  { %318 = vpush %v260_v25 }
 0x3b7   :  { %s313_s11 = spop %312 }
 0x3b8   :  { %s264_s12 = scvt.s32.f32 %s313_s11  ;;  %s315_s13 = spop %314 }
 0x3b9   :  { %s233_s14 = sadd.s32 1, %s315_s13  ;;  %s317_s15 = spop %316 }
 0x3ba   :  { %p263_p11 = scmp.gt.s32.totalorder %s233_s14, 0  ;;  %s272_s16 = scvt.s32.f32 %s233_s14 }
 0x3bb   :  { %s268_s17 = scvt.s32.f32 %s317_s15  ;;  %s319_s18 = spop %318 }
 0x3bc   :  { %s485_s12 = smov (!%p263_p11, %s264_s12), 0.0  ;;  %s487_s16 = smov (!%p263_p11, %s272_s16), 1.0 }
 0x3bd   :  { %267 = sst [smem:[#allocation5 + $0x80]] %s485_s12  ;;  %s262_s19 = sadd.s32 1, %s319_s18 }
 0x3be   :  { %275 = sst [smem:[#allocation5 + $0x82]] %s487_s16  ;;  %s276_s0 = scvt.s32.f32 %s262_s19 }
 0x3bf   :  { %s489_s17 = smov (!%p263_p11, %s268_s17), 0.0 }
 0x3c0   :  { %s491_s0 = smov (!%p263_p11, %s276_s0), 1.0  ;;  %271 = sst [smem:[#allocation5 + $0x81]] %s489_s17 }
 0x3c1   :  { %279 = sst [smem:[#allocation5 + $0x83]] %s491_s0 }
 0x3c2   :  { %357 = shalt.err (!%p354_p0)
}
 0x3c3   :  { %s365_s27 = smov [#allocation5]   ;;  %s366_s28 = smov 16  }
 0x3c4   :  { %s367_s29 = smov 1  }
 0x3c5   :  { %289 = dma.smem_to_hbm %s365_s27, 32, %s470_s1, [#allocation4], %s366_s28, %s366_s28, %s367_s29  }
 0x3c6   :  { %360 = dma.done.wait [#allocation4], 32  }
 0x3c7   :  { %361 = vsyncadd [#allocation4], 4294967264 }
 0x3c8   :  { %293 = sfence }
 0x3c9   :  { %294 = vsyncpa [#allocation3], 1 }
 0x3ca   :  { %295 = vsyncpa [#allocation4], 1 }

</bundles_post_ra>
